<compile_context>
chip_gen: v6e
topology: v6e:2x2x1
jax: 0.10.0
libtpu: 0.0.40
codegen_flags: <defaults>
</compile_context>

<pallas_src>
import functools

import jax
import jax.numpy as jnp
from jax.experimental import pallas as pl
from jax.experimental.pallas import tpu as pltpu

LATENT_H = 5
LATENT_W = 5


def _round_up(x, m):
    return ((x + m - 1) // m) * m


def _sad_kernel(l_ref, r_ref, heat_ref, *, lh, lw, C, W, HW):
    """One block of N-slices.

    l_ref / r_ref: (n_blk, C*H*W) VMEM tiles (lane axis = C*H*W, lane-dense).
    heat_ref:      (n_blk, H*W)   center-anchored heatmap; border positions
                   (y >= Ho or x >= Wo) contain junk the wrapper discards.
    """
    chw = l_ref.shape[-1]
    rh, rw = (lh - 1) // 2, (lw - 1) // 2

    # Diff in f32 (inputs may arrive bf16; v5e has no bf16 VPU).
    d = l_ref[...].astype(jnp.float32) - r_ref[...].astype(jnp.float32)

    # Separable, center-anchored stride-1 box *sum* along the flattened
    # C*H*W lane axis using full-width XLU rotates -- no unaligned lane
    # slices (which would materialize shifted copies).  For the odd default
    # window the offset sets are symmetric, so the result is independent of
    # the rotate direction convention.  Wrap-around (across row / channel
    # boundaries) only affects output positions whose window leaves its own
    # H*W segment, i.e. exactly the y >= Ho / x >= Wo border the wrapper
    # slices away.
    acc_w = d
    for a in range(lw):
        off = a - rw
        if off == 0:
            continue
        acc_w = acc_w + pltpu.roll(d, shift=(-off) % chw, axis=1)
    acc = acc_w
    for b in range(lh):
        off = (b - rh) * W
        if off == 0:
            continue
        acc = acc + pltpu.roll(acc_w, shift=(-off) % chw, axis=1)

    # TODO(synk): if per-step compute still exceeds DMA on v6e/v7x, this box
    # sum could be offloaded to the MXU as a bf16 matmul against a static
    # banded pooling matrix; kept on the VPU here for precision/portability.

    sq = acc * acc                                     # (n_blk, C*H*W) f32

    # Channel reduce: C aligned lane slices of width H*W (multiple of 128
    # here), summed on the VPU -- no cross-sublane reduce, no relayout.
    h2 = sq[:, 0:HW]
    for c in range(1, C):
        h2 = h2 + sq[:, c * HW:(c + 1) * HW]

    # Single scale on the small heatmap instead of a full-tensor
    # (1/(lh*lw)) pass over (n_blk, C*H*W).
    heat_ref[...] = jnp.sqrt(h2) * (1.0 / float(lh * lw))


def spatial_asymmetry_detector(left_features, right_features,
                               latent_h=LATENT_H, latent_w=LATENT_W):
    """left_features, right_features: (B, T, C, H, W); any float dtype."""
    assert left_features.shape == right_features.shape
    B, T, C, H, W = left_features.shape
    assert H >= latent_h and W >= latent_w
    Ho = H - latent_h + 1
    Wo = W - latent_w + 1
    rh, rw = (latent_h - 1) // 2, (latent_w - 1) // 2
    HW = H * W
    CHW = C * HW

    N = B * T
    itemsize = jnp.dtype(left_features.dtype).itemsize

    # --- block sizing --------------------------------------------------------
    # Real per-slice VMEM model: 2 sides x 2 pipeline buffers of the input
    # row, ~4 live f32 temporaries (d / acc_w / acc / sq), 2 output buffers.
    per_slice_vmem = 4 * CHW * itemsize + 4 * CHW * 4 + 2 * HW * 4
    vmem_target = 10 * 1024 * 1024        # fits v5e's 16 MiB scoped default
    n_blk = max(1, min(N, vmem_target // max(per_slice_vmem, 1)))
    if N >= 64:
        # >= 8 grid steps when there is enough work (>= 4 per v7x TensorCore)
        n_blk = min(n_blk, -(-N // 8))
    n_blk = _round_up(max(n_blk, 1), 8)   # sublane-dense blocks & stores
    n_blk = min(n_blk, _round_up(N, 8))
    num_blocks = -(-N // n_blk)
    N_pad = num_blocks * n_blk

    # Flatten (B,T,C,H,W) -> (N, C*H*W): contiguous, native dtype (the f32
    # upcast happens inside the kernel, not as an extra HBM pass).
    l2 = left_features.reshape(N, CHW)
    r2 = right_features.reshape(N, CHW)
    if N_pad != N:
        pad = ((0, N_pad - N), (0, 0))
        l2 = jnp.pad(l2, pad)
        r2 = jnp.pad(r2, pad)

    kernel = functools.partial(_sad_kernel, lh=latent_h, lw=latent_w,
                               C=C, W=W, HW=HW)

    in_spec = pl.BlockSpec((n_blk, CHW), lambda i: (i, 0))
    out_spec = pl.BlockSpec((n_blk, HW), lambda i: (i, 0))

    vmem_est = n_blk * per_slice_vmem
    vmem_limit = int(min(32 * 1024 * 1024,
                         max(16 * 1024 * 1024, 3 * vmem_est)))

    flops = N_pad * ((latent_w - 1 + latent_h - 1 + 2) * CHW + C * HW + HW)
    cost = pl.CostEstimate(
        flops=int(flops),
        transcendentals=int(N_pad * HW),
        bytes_accessed=int(2 * N_pad * CHW * itemsize + N_pad * HW * 4))

    heat_full = pl.pallas_call(
        kernel,
        out_shape=jax.ShapeDtypeStruct((N_pad, HW), jnp.float32),
        grid_spec=pltpu.PrefetchScalarGridSpec(
            num_scalar_prefetch=0,
            grid=(num_blocks,),
            in_specs=[in_spec, in_spec],
            out_specs=out_spec,
        ),
        compiler_params=pltpu.CompilerParams(
            dimension_semantics=("parallel",),
            vmem_limit_bytes=vmem_limit),
        cost_estimate=cost,
    )(l2, r2)

    # --- glue (plain JAX / XLA): valid-window slice, max / argmax ------------
    # heat_full[n, cy*W + cx] is the pool *centered* at (cy, cx); the valid
    # output (y, x), y < Ho, x < Wo, lives at (cy, cx) = (y + rh, x + rw).
    heat = heat_full[:N].reshape(N, H, W)[:, rh:rh + Ho, rw:rw + Wo]
    heat = heat.reshape(B, T, Ho, Wo)

    flat = heat.reshape(B, T, Ho * Wo)
    asym_values = jnp.max(flat, axis=-1)                       # (B, T)
    idx = jnp.argmax(flat, axis=-1).astype(jnp.int32)          # first occurrence
    x = idx % Wo                                               # column
    y = idx // Wo                                              # row
    # TODO(synk): [x, y] ordering / tie-breaking assumed to match the original
    # hybrid_asymmetry's (x_argmin, y_argmin); verify against the source.
    coords = jnp.stack([x, y], axis=-1)                        # (B, T, 2)

    return {
        "asymmetry_values": asym_values,
        "asymmetry_coords": coords,
        "heatmap": heat,                                       # (B, T, Ho, Wo)
    }


if __name__ == "__main__":
    key = jax.random.PRNGKey(0)
    k_l, k_r = jax.random.split(key)
    B, T, C, H, W = 2, 3, 4, 16, 16
    left = jax.random.normal(k_l, (B, T, C, H, W), dtype=jnp.float32)
    right = jax.random.normal(k_r, (B, T, C, H, W), dtype=jnp.float32)

    out = spatial_asymmetry_detector(left, right)
    jax.block_until_ready(out)

    Ho, Wo = H - LATENT_H + 1, W - LATENT_W + 1
    assert out["asymmetry_values"].shape == (B, T)
    assert out["asymmetry_coords"].shape == (B, T, 2)
    assert out["heatmap"].shape == (B, T, Ho, Wo)

    # Pure-JAX reference for correctness.
    d = left - right
    acc = jnp.zeros((B, T, C, Ho, Wo), jnp.float32)
    for dy in range(LATENT_H):
        for dx in range(LATENT_W):
            acc = acc + d[..., dy:dy + Ho, dx:dx + Wo]
    pooled = acc / float(LATENT_H * LATENT_W)
    ref_heat = jnp.sqrt(jnp.sum(pooled * pooled, axis=2))
    ref_vals = jnp.max(ref_heat.reshape(B, T, -1), axis=-1)

    assert jnp.allclose(out["heatmap"], ref_heat, rtol=1e-4, atol=1e-4)
    assert jnp.allclose(out["asymmetry_values"], ref_vals, rtol=1e-4, atol=1e-4)

    print("KERNEL_OK")
</pallas_src>

<mosaic_0001>
module attributes {stable_mosaic.version = 11 : i64} {
  func.func @_sad_kernel(%arg0: i32, %arg1: memref<8x1024xf32, #tpu.memory_space<vmem>>, %arg2: memref<8x1024xf32, #tpu.memory_space<vmem>>, %arg3: memref<8x256xf32, #tpu.memory_space<vmem>>) attributes {dimension_semantics = [#tpu.dimension_semantics<parallel>], iteration_bounds = array<i64: 1>, scalar_prefetch = 0 : i64, scratch_operands = 0 : i64, tpu.core_type = #tpu.core_type<tc>, window_params = [{transform_indices = @transform_0, window_bounds = array<i64: 8, 1024>}, {transform_indices = @transform_1, window_bounds = array<i64: 8, 1024>}, {transform_indices = @transform_2, window_bounds = array<i64: 8, 256>}]} {
    %c0 = arith.constant 0 : index
    %c0_0 = arith.constant 0 : index
    %0 = vector.load %arg1[%c0, %c0_0] : memref<8x1024xf32, #tpu.memory_space<vmem>>, vector<8x1024xf32>
    %c0_1 = arith.constant 0 : index
    %c0_2 = arith.constant 0 : index
    %1 = vector.load %arg2[%c0_1, %c0_2] : memref<8x1024xf32, #tpu.memory_space<vmem>>, vector<8x1024xf32>
    %2 = arith.subf %0, %1 : vector<8x1024xf32>
    %c2_i32 = arith.constant 2 : i32
    %3 = tpu.dynamic_rotate %2 by %c2_i32 dim 1 : vector<8x1024xf32>, i32 -> vector<8x1024xf32>
    %4 = arith.addf %2, %3 : vector<8x1024xf32>
    %c1_i32 = arith.constant 1 : i32
    %5 = tpu.dynamic_rotate %2 by %c1_i32 dim 1 : vector<8x1024xf32>, i32 -> vector<8x1024xf32>
    %6 = arith.addf %4, %5 : vector<8x1024xf32>
    %c1023_i32 = arith.constant 1023 : i32
    %7 = tpu.dynamic_rotate %2 by %c1023_i32 dim 1 : vector<8x1024xf32>, i32 -> vector<8x1024xf32>
    %8 = arith.addf %6, %7 : vector<8x1024xf32>
    %c1022_i32 = arith.constant 1022 : i32
    %9 = tpu.dynamic_rotate %2 by %c1022_i32 dim 1 : vector<8x1024xf32>, i32 -> vector<8x1024xf32>
    %10 = arith.addf %8, %9 : vector<8x1024xf32>
    %c32_i32 = arith.constant 32 : i32
    %11 = tpu.dynamic_rotate %10 by %c32_i32 dim 1 : vector<8x1024xf32>, i32 -> vector<8x1024xf32>
    %12 = arith.addf %10, %11 : vector<8x1024xf32>
    %c16_i32 = arith.constant 16 : i32
    %13 = tpu.dynamic_rotate %10 by %c16_i32 dim 1 : vector<8x1024xf32>, i32 -> vector<8x1024xf32>
    %14 = arith.addf %12, %13 : vector<8x1024xf32>
    %c1008_i32 = arith.constant 1008 : i32
    %15 = tpu.dynamic_rotate %10 by %c1008_i32 dim 1 : vector<8x1024xf32>, i32 -> vector<8x1024xf32>
    %16 = arith.addf %14, %15 : vector<8x1024xf32>
    %c992_i32 = arith.constant 992 : i32
    %17 = tpu.dynamic_rotate %10 by %c992_i32 dim 1 : vector<8x1024xf32>, i32 -> vector<8x1024xf32>
    %18 = arith.addf %16, %17 : vector<8x1024xf32>
    %19 = arith.mulf %18, %18 : vector<8x1024xf32>
    %20 = vector.extract_strided_slice %19 {offsets = [0, 0], sizes = [8, 256], strides = [1, 1]} : vector<8x1024xf32> to vector<8x256xf32>
    %21 = vector.extract_strided_slice %19 {offsets = [0, 256], sizes = [8, 256], strides = [1, 1]} : vector<8x1024xf32> to vector<8x256xf32>
    %22 = arith.addf %20, %21 : vector<8x256xf32>
    %23 = vector.extract_strided_slice %19 {offsets = [0, 512], sizes = [8, 256], strides = [1, 1]} : vector<8x1024xf32> to vector<8x256xf32>
    %24 = arith.addf %22, %23 : vector<8x256xf32>
    %25 = vector.extract_strided_slice %19 {offsets = [0, 768], sizes = [8, 256], strides = [1, 1]} : vector<8x1024xf32> to vector<8x256xf32>
    %26 = arith.addf %24, %25 : vector<8x256xf32>
    %27 = math.sqrt %26 : vector<8x256xf32>
    %cst = arith.constant 4.000000e-02 : f32
    %28 = vector.broadcast %cst : f32 to vector<8x256xf32>
    %29 = arith.mulf %27, %28 : vector<8x256xf32>
    %c0_3 = arith.constant 0 : index
    %c0_4 = arith.constant 0 : index
    %30 = vector.load %arg3[%c0_3, %c0_4] : memref<8x256xf32, #tpu.memory_space<vmem>>, vector<8x256xf32>
    tpu.vector_store %arg3[%c0_3, %c0_4], %29 {strides = array<i32>} : memref<8x256xf32, #tpu.memory_space<vmem>>, vector<8x256xf32>,
    return
  }
  func.func @transform_0(%arg0: i32) -> (i32, i32) {
    %c0_i32 = arith.constant 0 : i32
    %c0_i32_0 = arith.constant 0 : i32
    return %arg0, %c0_i32 : i32, i32
  }
  func.func @transform_1(%arg0: i32) -> (i32, i32) {
    %c0_i32 = arith.constant 0 : i32
    %c0_i32_0 = arith.constant 0 : i32
    return %arg0, %c0_i32 : i32, i32
  }
  func.func @transform_2(%arg0: i32) -> (i32, i32) {
    %c0_i32 = arith.constant 0 : i32
    %c0_i32_0 = arith.constant 0 : i32
    return %arg0, %c0_i32 : i32, i32
  }
}

</mosaic_0001>

<bundles_post_ra>
// kernel: tpu_custom_call.1
= control target key start
LH: loop header
LB: loop body
LE: loop exit
PB: predicated region body
PF: predicated region fallthrough
CT: control target
= control target key end

     0   :  { %7 = vsyncpa [#allocation3], 0  ;;  %s788_s0 = inlined_call_operand.hbm [shape: f32[8,1024], index: 0, kind: input, shape index: {}]   ;;  %s789_s1 = inlined_call_operand.hbm [shape: f32[8,1024], index: 1, kind: input, shape index: {}]   ;;  %s790_s2 = inlined_call_operand.hbm [shape: f32[8,256], index: 2, kind: output, shape index: {}]  }
   0x1   :  { %8 = vsyncpa [#allocation6], 0 }
   0x2   :  { %9 = vsyncpa [#allocation4], 0  ;;  %s455_s9 = smov [#allocation2]   ;;  %s456_s11 = smov [#allocation5]  }
   0x3   :  { %s16_s10 = sshll.u32 %s455_s9, 4  ;;  %s26_s12 = sshll.u32 %s456_s11, 4  ;;  %s17_s10 = int_to_ptr.vmem [resolvable:$true] %s16_s10  ;;  %s27_s12 = int_to_ptr.vmem [resolvable:$true] %s26_s12 }
   0x4   :  { %s397_s13 = scalar_lea.vmem %s17_s10, 1024  ;;  %p402_p1 = scmp.lt.s32.totalorder %s17_s10, %s17_s10 }
   0x5   :  { %p398_p0 = scmp.ne.s32.totalorder %s17_s10, %s397_s13  ;;  %p403_p2 = scmp.lt.s32.totalorder %s397_s13, %s397_s13 }
   0x7   :  { %p404_p3 = por %p403_p2, %p402_p1 }
   0x9   :  { %p405_p4 = pnand %p404_p3, %p398_p0 }
   0xb   :  { %408 = shalt.err (!%p405_p4)
}
   0xc   :  { %19 = dma.hbm_to_vmem [thread:$0]  %s788_s0, 1024, %s17_s10, [#allocation3]  }
   0xd   :  { %s417_s16 = scalar_lea.vmem %s27_s12, 1024  ;;  %p422_p6 = scmp.lt.s32.totalorder %s27_s12, %s27_s12 }
   0xe   :  { %p418_p5 = scmp.ne.s32.totalorder %s27_s12, %s417_s16  ;;  %p423_p7 = scmp.lt.s32.totalorder %s417_s16, %s417_s16 }
  0x10   :  { %p424_p8 = por %p423_p7, %p422_p6 }
  0x12   :  { %p425_p9 = pnand %p424_p8, %p418_p5 }
  0x14   :  { %428 = shalt.err (!%p425_p9)
}
  0x15   :  { %29 = dma.hbm_to_vmem [thread:$0]  %s789_s1, 1024, %s27_s12, [#allocation6]  }
  0x16   :  { %449 = dma.done.wait [#allocation3], 1024  }
  0x17   :  { %450 = vsyncadd [#allocation3], 4294966272 }
  0x18   :  { %451 = dma.done.wait [#allocation6], 1024  }
  0x19   :  { %452 = vsyncadd [#allocation6], 4294966272  ;;  %v38_v0 = vld [vmem:[#allocation2 + $0x10] sm:$0xff]  ;;  %v36_v2 = vld [vmem:[#allocation2] sm:$0xff]  ;;  %s457_s0 = smov 2   ;;  %s458_s1 = smov 1   ;;  %v76_v41 = vlaneseq }
  0x1a   :  { %v46_v1 = vld [vmem:[#allocation5 + $0x10] sm:$0xff]  ;;  %v44_v4 = vld [vmem:[#allocation5] sm:$0xff]  ;;  %v39_v5 = vld [vmem:[#allocation2 + $0x18] sm:$0xff]  ;;  %s459_s19 = smov 127   ;;  %s460_s20 = smov 126  }
  0x1b   :  { %v487_v3 = vsub.f32 %v38_v0, %v46_v1  ;;  %v47_v6 = vld [vmem:[#allocation5 + $0x18] sm:$0xff]  ;;  %v489_v7 = vsub.f32 %v36_v2, %v44_v4  ;;  %v37_v8 = vld [vmem:[#allocation2 + $0x8] sm:$0xff]  ;;  %v42_v14 = vld [vmem:[#allocation2 + $0x30] sm:$0xff]  ;;  %v545_v44 = vand.u32 127, %v76_v41  ;;  %s461_s21 = smov 32   ;;  %s462_s22 = smov 16  }
  0x1c   :  { %v45_v9 = vld [vmem:[#allocation5 + $0x8] sm:$0xff]  ;;  %v492_v10 = vsub.f32 %v39_v5, %v47_v6  ;;  %v43_v12 = vld [vmem:[#allocation2 + $0x38] sm:$0xff]  ;;  %v50_v15 = vld [vmem:[#allocation5 + $0x30] sm:$0xff]  ;;  %s463_s23 = smov 112   ;;  %s464_s24 = smov 96  }
  0x1d   :  { %64 = vrot.lane.b32.xlu1 %v487_v3, %s457_s0  ;;  %60 = vrot.lane.b32.xlu0 %v489_v7, %s457_s0  ;;  %v495_v11 = vsub.f32 %v37_v8, %v45_v9  ;;  %v51_v13 = vld [vmem:[#allocation5 + $0x38] sm:$0xff]  ;;  %v501_v17 = vsub.f32 %v42_v14, %v50_v15  ;;  %v41_v18 = vld [vmem:[#allocation2 + $0x28] sm:$0xff]  ;;  %v40_v20 = vld [vmem:[#allocation2 + $0x20] sm:$0xff]  ;;  %vm78_vm0 = vcmp.lt.s32.totalorder %v545_v44, 2  ;;  %vm111_vm1 = vcmp.lt.s32.totalorder %v545_v44, 1  ;;  %s465_s25 = smov [#allocation7]  }
  0x1e   :  { %v498_v16 = vsub.f32 %v43_v12, %v51_v13  ;;  %v49_v19 = vld [vmem:[#allocation5 + $0x28] sm:$0xff]  ;;  %v48_v21 = vld [vmem:[#allocation5 + $0x20] sm:$0xff]  ;;  %vm144_vm2 = vcmp.lt.s32.totalorder %v545_v44, 127  ;;  %vm177_vm3 = vcmp.lt.s32.totalorder %v545_v44, 126  ;;  %vm210_vm4 = vcmp.lt.s32.totalorder %v545_v44, 32  ;;  %s364_s26 = sshll.u32 %s465_s25, 4  ;;  %s365_s26 = int_to_ptr.vmem [resolvable:$true] %s364_s26 }
  0x1f   :  { %v504_v22 = vsub.f32 %v41_v18, %v49_v19  ;;  %v507_v23 = vsub.f32 %v40_v20, %v48_v21  ;;  %vm243_vm5 = vcmp.lt.s32.totalorder %v545_v44, 16  ;;  %vm276_vm6 = vcmp.lt.s32.totalorder %v545_v44, 112  ;;  %s429_s27 = scalar_lea.vmem %s365_s26, 256  ;;  %p434_p11 = scmp.lt.s32.totalorder %s365_s26, %s365_s26 }
  0x20   :  { %vm309_vm7 = vcmp.lt.s32.totalorder %v545_v44, 96  ;;  %p430_p10 = scmp.ne.s32.totalorder %s365_s26, %s429_s27  ;;  %p435_p12 = scmp.lt.s32.totalorder %s429_s27, %s429_s27 }
  0x21   :  { %66 = vrot.lane.b32.xlu1 %v492_v10, %s457_s0  ;;  %62 = vrot.lane.b32.xlu0 %v495_v11, %s457_s0 }
  0x22   :  { %p436_p13 = por %p435_p12, %p434_p11 }
  0x24   :  { %p437_p0 = pnand %p436_p13, %p430_p10 }
  0x25   :  { %74 = vrot.lane.b32.xlu1 %v498_v16, %s457_s0  ;;  %72 = vrot.lane.b32.xlu0 %v501_v17, %s457_s0 }
  0x29   :  { %70 = vrot.lane.b32.xlu1 %v504_v22, %s457_s0  ;;  %68 = vrot.lane.b32.xlu0 %v507_v23, %s457_s0 }
  0x2d   :  { %97 = vrot.lane.b32.xlu1 %v495_v11, %s458_s1  ;;  %95 = vrot.lane.b32.xlu0 %v489_v7, %s458_s1 }
  0x31   :  { %101 = vrot.lane.b32.xlu1 %v492_v10, %s458_s1  ;;  %99 = vrot.lane.b32.xlu0 %v487_v3, %s458_s1 }
  0x35   :  { %109 = vrot.lane.b32.xlu1 %v498_v16, %s458_s1  ;;  %107 = vrot.lane.b32.xlu0 %v501_v17, %s458_s1 }
  0x39   :  { %105 = vrot.lane.b32.xlu1 %v504_v22, %s458_s1  ;;  %103 = vrot.lane.b32.xlu0 %v507_v23, %s458_s1 }
  0x3d   :  { %130 = vrot.lane.b32.xlu1 %v495_v11, %s459_s19  ;;  %128 = vrot.lane.b32.xlu0 %v489_v7, %s459_s19 }
  0x41   :  { %134 = vrot.lane.b32.xlu1 %v492_v10, %s459_s19  ;;  %132 = vrot.lane.b32.xlu0 %v487_v3, %s459_s19 }
  0x45   :  { %142 = vrot.lane.b32.xlu1 %v498_v16, %s459_s19  ;;  %136 = vrot.lane.b32.xlu0 %v507_v23, %s459_s19 }
  0x49   :  { %140 = vrot.lane.b32.xlu1 %v501_v17, %s459_s19  ;;  %138 = vrot.lane.b32.xlu0 %v504_v22, %s459_s19 }
  0x4d   :  { %163 = vrot.lane.b32.xlu1 %v495_v11, %s460_s20  ;;  %161 = vrot.lane.b32.xlu0 %v489_v7, %s460_s20 }
  0x51   :  { %167 = vrot.lane.b32.xlu1 %v492_v10, %s460_s20  ;;  %165 = vrot.lane.b32.xlu0 %v487_v3, %s460_s20 }
  0x55   :  { %175 = vrot.lane.b32.xlu1 %v498_v16, %s460_s20  ;;  %169 = vrot.lane.b32.xlu0 %v507_v23, %s460_s20 }
  0x59   :  { %173 = vrot.lane.b32.xlu1 %v501_v17, %s460_s20  ;;  %171 = vrot.lane.b32.xlu0 %v504_v22, %s460_s20 }
  0x8f   :  { %v65_v24 = vpop.permute.xlu1 %64  ;;  %v61_v25 = vpop.permute.xlu0 %60 }
  0x93   :  { %v67_v26 = vpop.permute.xlu1 %66  ;;  %v63_v27 = vpop.permute.xlu0 %62 }
  0x94   :  { %v84_v53 = vsel %vm78_vm0, %v63_v27, %v65_v24  ;;  %v85_v54 = vsel %vm78_vm0, %v61_v25, %v63_v27  ;;  %v83_v57 = vsel %vm78_vm0, %v65_v24, %v67_v26 }
  0x95   :  { %v88_v61 = vadd.f32 %v85_v54, %v495_v11  ;;  %v89_v62 = vadd.f32 %v84_v53, %v487_v3  ;;  %v90_v9 = vadd.f32 %v83_v57, %v492_v10 }
  0x97   :  { %v75_v28 = vpop.permute.xlu1 %74  ;;  %v535_v29 = vpop.permute.xlu0 %72 }
  0x98   :  { %v86_v48 = vsel %vm78_vm0, %v75_v28, %v61_v25  ;;  %v79_v63 = vsel %vm78_vm0, %v535_v29, %v75_v28 }
  0x99   :  { %v87_v51 = vadd.f32 %v86_v48, %v489_v7  ;;  %v94_v11 = vadd.f32 %v79_v63, %v498_v16 }
  0x9b   :  { %v537_v30 = vpop.permute.xlu1 %70  ;;  %v69_v31 = vpop.permute.xlu0 %68 }
  0x9c   :  { %v81_v12 = vsel %vm78_vm0, %v69_v31, %v537_v30  ;;  %v82_v15 = vsel %vm78_vm0, %v67_v26, %v69_v31 }
  0x9d   :  { %v91_v31 = vadd.f32 %v82_v15, %v507_v23 }
  0x9f   :  { %v98_v32 = vpop.permute.xlu1 %97  ;;  %v96_v33 = vpop.permute.xlu0 %95 }
  0xa0   :  { %v118_v58 = vsel %vm111_vm1, %v96_v33, %v98_v32 }
  0xa1   :  { %v121_v6 = vadd.f32 %v118_v58, %v88_v61  ;;  %v80_v58 = vsel %vm78_vm0, %v537_v30, %v535_v29 }
  0xa3   :  { %v539_v34 = vpop.permute.xlu1 %101  ;;  %v100_v35 = vpop.permute.xlu0 %99 }
  0xa4   :  { %v117_v59 = vsel %vm111_vm1, %v98_v32, %v100_v35  ;;  %v116_v13 = vsel %vm111_vm1, %v100_v35, %v539_v34 }
  0xa5   :  { %v122_v7 = vadd.f32 %v117_v59, %v89_v62  ;;  %v123_v26 = vadd.f32 %v116_v13, %v90_v9 }
  0xa7   :  { %v110_v36 = vpop.permute.xlu1 %109  ;;  %v541_v37 = vpop.permute.xlu0 %107 }
  0xa8   :  { %v119_v49 = vsel %vm111_vm1, %v110_v36, %v96_v33  ;;  %v112_v3 = vsel %vm111_vm1, %v541_v37, %v110_v36 }
  0xa9   :  { %v120_v56 = vadd.f32 %v119_v49, %v87_v51  ;;  %v127_v20 = vadd.f32 %v112_v3, %v94_v11 }
  0xab   :  { %v543_v38 = vpop.permute.xlu1 %105  ;;  %v104_v39 = vpop.permute.xlu0 %103 }
  0xac   :  { %v114_v32 = vsel %vm111_vm1, %v104_v39, %v543_v38  ;;  %v115_v33 = vsel %vm111_vm1, %v539_v34, %v104_v39  ;;  %v113_v59 = vsel %vm111_vm1, %v543_v38, %v541_v37 }
  0xaf   :  { %v131_v40 = vpop.permute.xlu1 %130  ;;  %v129_v42 = vpop.permute.xlu0 %128 }
  0xb0   :  { %v151_v55 = vsel %vm144_vm2, %v129_v42, %v131_v40 }
  0xb1   :  { %v153_v0 = vadd.f32 %v151_v55, %v120_v56 }
  0xb3   :  { %v135_v43 = vpop.permute.xlu1 %134  ;;  %v133_v45 = vpop.permute.xlu0 %132 }
  0xb4   :  { %v149_v2 = vsel %vm144_vm2, %v133_v45, %v135_v43  ;;  %v150_v4 = vsel %vm144_vm2, %v131_v40, %v133_v45  ;;  %v92_v40 = vadd.f32 %v81_v12, %v504_v22  ;;  %v124_v45 = vadd.f32 %v115_v33, %v91_v31 }
  0xb5   :  { %v154_v18 = vadd.f32 %v150_v4, %v121_v6  ;;  %v155_v19 = vadd.f32 %v149_v2, %v122_v7 }
  0xb6   :  { %v125_v48 = vadd.f32 %v114_v32, %v92_v40 }
  0xb7   :  { %v547_v46 = vpop.permute.xlu1 %142  ;;  %v137_v47 = vpop.permute.xlu0 %136 }
  0xb8   :  { %v152_v10 = vsel %vm144_vm2, %v547_v46, %v129_v42  ;;  %v148_v21 = vsel %vm144_vm2, %v135_v43, %v137_v47 }
  0xb9   :  { %v160_v35 = vadd.f32 %v152_v10, %v127_v20  ;;  %v156_v41 = vadd.f32 %v148_v21, %v123_v26 }
  0xbb   :  { %v556_v50 = vpop.permute.xlu1 %140  ;;  %v139_v52 = vpop.permute.xlu0 %138 }
  0xbc   :  { %v146_v43 = vsel %vm144_vm2, %v139_v52, %v556_v50  ;;  %v147_v34 = vsel %vm144_vm2, %v137_v47, %v139_v52  ;;  %v145_v61 = vsel %vm144_vm2, %v556_v50, %v547_v46 }
  0xbd   :  { %v157_v53 = vadd.f32 %v147_v34, %v124_v45  ;;  %v158_v54 = vadd.f32 %v146_v43, %v125_v48 }
  0xbf   :  { %v164_v60 = vpop.permute.xlu1 %163  ;;  %v162_v1 = vpop.permute.xlu0 %161 }
  0xc0   :  { %v184_v5 = vsel %vm177_vm3, %v162_v1, %v164_v60 }
  0xc1   :  { %v586_v8 = vadd.f32 %v184_v5, %v153_v0 }
  0xc3   :  { %v168_v14 = vpop.permute.xlu1 %167  ;;  %194 = vrot.lane.b32.xlu0 %v586_v8, %s461_s21  ;;  %v166_v16 = vpop.permute.xlu0 %165 }
  0xc4   :  { %v182_v24 = vsel %vm177_vm3, %v166_v16, %v168_v14  ;;  %v183_v25 = vsel %vm177_vm3, %v164_v60, %v166_v16  ;;  %v93_v60 = vadd.f32 %v80_v58, %v501_v17 }
  0xc5   :  { %v609_v27 = vadd.f32 %v183_v25, %v154_v18  ;;  %v611_v28 = vadd.f32 %v182_v24, %v155_v19 }
  0xc6   :  { %v126_v62 = vadd.f32 %v113_v59, %v93_v60 }
  0xc7   :  { %v176_v36 = vpop.permute.xlu1 %175  ;;  %196 = vrot.lane.b32.xlu1 %v609_v27, %s461_s21  ;;  %198 = vrot.lane.b32.xlu0 %v611_v28, %s461_s21  ;;  %v170_v23 = vpop.permute.xlu0 %169 }
  0xc8   :  { %v185_v42 = vsel %vm177_vm3, %v176_v36, %v162_v1  ;;  %v181_v22 = vsel %vm177_vm3, %v168_v14, %v170_v23  ;;  %v159_v30 = vadd.f32 %v145_v61, %v126_v62 }
  0xc9   :  { %v632_v39 = vadd.f32 %v185_v42, %v160_v35  ;;  %v636_v49 = vadd.f32 %v181_v22, %v156_v41 }
  0xcb   :  { %v174_v51 = vpop.permute.xlu1 %173  ;;  %208 = vrot.lane.b32.xlu0 %v632_v39, %s461_s21  ;;  %200 = vrot.lane.b32.xlu1 %v636_v49, %s461_s21  ;;  %v172_v55 = vpop.permute.xlu0 %171 }
  0xcc   :  { %v179_v47 = vsel %vm177_vm3, %v172_v55, %v174_v51  ;;  %v180_v52 = vsel %vm177_vm3, %v170_v23, %v172_v55  ;;  %v178_v29 = vsel %vm177_vm3, %v174_v51, %v176_v36 }
  0xcd   :  { %v646_v56 = vadd.f32 %v180_v52, %v157_v53  ;;  %v648_v57 = vadd.f32 %v179_v47, %v158_v54  ;;  %v673_v17 = vadd.f32 %v178_v29, %v159_v30 }
  0xcf   :  { %202 = vrot.lane.b32.xlu1 %v646_v56, %s461_s21  ;;  %204 = vrot.lane.b32.xlu0 %v648_v57, %s461_s21 }
  0xd3   :  { %227 = vrot.lane.b32.xlu1 %v586_v8, %s462_s22  ;;  %229 = vrot.lane.b32.xlu0 %v609_v27, %s462_s22 }
  0xd7   :  { %231 = vrot.lane.b32.xlu1 %v611_v28, %s462_s22  ;;  %233 = vrot.lane.b32.xlu0 %v636_v49, %s462_s22 }
  0xdb   :  { %241 = vrot.lane.b32.xlu1 %v632_v39, %s462_s22  ;;  %206 = vrot.lane.b32.xlu0 %v673_v17, %s461_s21 }
  0xdf   :  { %235 = vrot.lane.b32.xlu1 %v646_v56, %s462_s22  ;;  %237 = vrot.lane.b32.xlu0 %v648_v57, %s462_s22 }
  0xe3   :  { %260 = vrot.lane.b32.xlu1 %v586_v8, %s463_s23  ;;  %262 = vrot.lane.b32.xlu0 %v609_v27, %s463_s23 }
  0xe7   :  { %264 = vrot.lane.b32.xlu1 %v611_v28, %s463_s23  ;;  %266 = vrot.lane.b32.xlu0 %v636_v49, %s463_s23 }
  0xeb   :  { %268 = vrot.lane.b32.xlu1 %v646_v56, %s463_s23  ;;  %239 = vrot.lane.b32.xlu0 %v673_v17, %s462_s22 }
  0xef   :  { %270 = vrot.lane.b32.xlu1 %v648_v57, %s463_s23  ;;  %272 = vrot.lane.b32.xlu0 %v673_v17, %s463_s23 }
  0xf3   :  { %293 = vrot.lane.b32.xlu1 %v586_v8, %s464_s24  ;;  %295 = vrot.lane.b32.xlu0 %v609_v27, %s464_s24 }
  0xf7   :  { %297 = vrot.lane.b32.xlu1 %v611_v28, %s464_s24  ;;  %299 = vrot.lane.b32.xlu0 %v636_v49, %s464_s24 }
  0xfb   :  { %301 = vrot.lane.b32.xlu1 %v646_v56, %s464_s24  ;;  %274 = vrot.lane.b32.xlu0 %v632_v39, %s463_s23 }
  0xff   :  { %303 = vrot.lane.b32.xlu1 %v648_v57, %s464_s24  ;;  %305 = vrot.lane.b32.xlu0 %v673_v17, %s464_s24 }
 0x103   :  { %307 = vrot.lane.b32.xlu1 %v632_v39, %s464_s24 }
 0x135   :  { %v195_v37 = vpop.permute.xlu0 %194 }
 0x139   :  { %v197_v38 = vpop.permute.xlu1 %196  ;;  %v199_v46 = vpop.permute.xlu0 %198 }
 0x13a   :  { %v217_v20 = vsel %vm210_vm4, %v195_v37, %v197_v38  ;;  %v216_v21 = vsel %vm210_vm4, %v197_v38, %v199_v46 }
 0x13b   :  { %v220_v35 = vadd.f32 %v217_v20, %v609_v27  ;;  %v221_v36 = vadd.f32 %v216_v21, %v611_v28 }
 0x13d   :  { %v201_v50 = vpop.permute.xlu1 %200  ;;  %v209_v63 = vpop.permute.xlu0 %208 }
 0x13e   :  { %v215_v24 = vsel %vm210_vm4, %v199_v46, %v201_v50  ;;  %v218_v25 = vsel %vm210_vm4, %v209_v63, %v195_v37 }
 0x13f   :  { %v222_v40 = vadd.f32 %v215_v24, %v636_v49  ;;  %v219_v42 = vadd.f32 %v218_v25, %v586_v8 }
 0x141   :  { %v203_v0 = vpop.permute.xlu1 %202  ;;  %v205_v1 = vpop.permute.xlu0 %204 }
 0x142   :  { %v214_v26 = vsel %vm210_vm4, %v201_v50, %v203_v0  ;;  %v213_v31 = vsel %vm210_vm4, %v203_v0, %v205_v1 }
 0x143   :  { %v223_v27 = vadd.f32 %v214_v26, %v646_v56  ;;  %v224_v28 = vadd.f32 %v213_v31, %v648_v57 }
 0x145   :  { %v228_v2 = vpop.permute.xlu1 %227  ;;  %v230_v4 = vpop.permute.xlu0 %229 }
 0x146   :  { %v250_v41 = vsel %vm243_vm5, %v228_v2, %v230_v4 }
 0x147   :  { %v253_v8 = vadd.f32 %v250_v41, %v220_v35 }
 0x149   :  { %v232_v5 = vpop.permute.xlu1 %231  ;;  %v234_v6 = vpop.permute.xlu0 %233 }
 0x14a   :  { %v249_v23 = vsel %vm243_vm5, %v230_v4, %v232_v5  ;;  %v248_v43 = vsel %vm243_vm5, %v232_v5, %v234_v6 }
 0x14b   :  { %v254_v55 = vadd.f32 %v249_v23, %v221_v36  ;;  %v255_v47 = vadd.f32 %v248_v43, %v222_v40 }
 0x14d   :  { %v242_v7 = vpop.permute.xlu1 %241  ;;  %v207_v3 = vpop.permute.xlu0 %206 }
 0x14e   :  { %v251_v34 = vsel %vm243_vm5, %v242_v7, %v228_v2  ;;  %v211_v22 = vsel %vm210_vm4, %v207_v3, %v209_v63  ;;  %v212_v45 = vsel %vm210_vm4, %v205_v1, %v207_v3 }
 0x14f   :  { %v252_v52 = vadd.f32 %v251_v34, %v219_v42  ;;  %v225_v57 = vadd.f32 %v212_v45, %v673_v17  ;;  %v226_v58 = vadd.f32 %v211_v22, %v632_v39 }
 0x151   :  { %v236_v9 = vpop.permute.xlu1 %235  ;;  %v238_v11 = vpop.permute.xlu0 %237 }
 0x152   :  { %v247_v59 = vsel %vm243_vm5, %v234_v6, %v236_v9  ;;  %v246_v60 = vsel %vm243_vm5, %v236_v9, %v238_v11 }
 0x153   :  { %v256_v4 = vadd.f32 %v247_v59, %v223_v27  ;;  %v257_v5 = vadd.f32 %v246_v60, %v224_v28 }
 0x155   :  { %v697_v12 = vpop.permute.xlu1 %260  ;;  %v263_v13 = vpop.permute.xlu0 %262 }
 0x156   :  { %v283_v48 = vsel %vm276_vm6, %v697_v12, %v263_v13 }
 0x157   :  { %v285_v61 = vadd.f32 %v283_v48, %v252_v52 }
 0x159   :  { %v265_v14 = vpop.permute.xlu1 %264  ;;  %v267_v15 = vpop.permute.xlu0 %266 }
 0x15a   :  { %v282_v49 = vsel %vm276_vm6, %v263_v13, %v265_v14  ;;  %v281_v51 = vsel %vm276_vm6, %v265_v14, %v267_v15 }
 0x15b   :  { %v286_v62 = vadd.f32 %v282_v49, %v253_v8  ;;  %v287_v29 = vadd.f32 %v281_v51, %v254_v55 }
 0x15d   :  { %v269_v18 = vpop.permute.xlu1 %268  ;;  %v240_v19 = vpop.permute.xlu0 %239 }
 0x15e   :  { %v280_v56 = vsel %vm276_vm6, %v267_v15, %v269_v18  ;;  %v244_v38 = vsel %vm243_vm5, %v240_v19, %v242_v7  ;;  %v245_v63 = vsel %vm243_vm5, %v238_v11, %v240_v19 }
 0x15f   :  { %v288_v37 = vadd.f32 %v280_v56, %v255_v47  ;;  %v258_v13 = vadd.f32 %v245_v63, %v225_v57  ;;  %v259_v14 = vadd.f32 %v244_v38, %v226_v58 }
 0x161   :  { %v271_v10 = vpop.permute.xlu1 %270  ;;  %v700_v16 = vpop.permute.xlu0 %272 }
 0x162   :  { %v279_v0 = vsel %vm276_vm6, %v269_v18, %v271_v10  ;;  %v278_v1 = vsel %vm276_vm6, %v271_v10, %v700_v16 }
 0x163   :  { %v289_v15 = vadd.f32 %v279_v0, %v256_v4  ;;  %v290_v11 = vadd.f32 %v278_v1, %v257_v5 }
 0x165   :  { %v716_v32 = vpop.permute.xlu1 %293  ;;  %v296_v33 = vpop.permute.xlu0 %295 }
 0x166   :  { %v316_v39 = vsel %vm309_vm7, %v716_v32, %v296_v33 }
 0x167   :  { %v318_v3 = vadd.f32 %v316_v39, %v285_v61 }
 0x169   :  { %v298_v53 = vpop.permute.xlu1 %297  ;;  %v300_v54 = vpop.permute.xlu0 %299  ;;  %v326_v35 = vmul.f32 %v318_v3, %v318_v3 }
 0x16a   :  { %v314_v30 = vsel %vm309_vm7, %v298_v53, %v300_v54  ;;  %v315_v17 = vsel %vm309_vm7, %v296_v33, %v298_v53 }
 0x16b   :  { %v320_v6 = vadd.f32 %v314_v30, %v287_v29  ;;  %v319_v9 = vadd.f32 %v315_v17, %v286_v62 }
 0x16d   :  { %v302_v46 = vpop.permute.xlu1 %301  ;;  %v275_v50 = vpop.permute.xlu0 %274  ;;  %v328_v25 = vmul.f32 %v320_v6, %v320_v6  ;;  %v327_v36 = vmul.f32 %v319_v9, %v319_v9 }
 0x16e   :  { %v313_v2 = vsel %vm309_vm7, %v300_v54, %v302_v46  ;;  %v277_v18 = vsel %vm276_vm6, %v700_v16, %v275_v50  ;;  %v284_v10 = vsel %vm276_vm6, %v275_v50, %v697_v12 }
 0x16f   :  { %v321_v7 = vadd.f32 %v313_v2, %v288_v37  ;;  %v291_v40 = vadd.f32 %v277_v18, %v258_v13  ;;  %v292_v41 = vadd.f32 %v284_v10, %v259_v14  ;;  %v334_v34 = vadd.f32 %v328_v25, %v326_v35 }
 0x171   :  { %v304_v19 = vpop.permute.xlu1 %303  ;;  %v306_v20 = vpop.permute.xlu0 %305  ;;  %v329_v26 = vmul.f32 %v321_v7, %v321_v7 }
 0x172   :  { %v312_v21 = vsel %vm309_vm7, %v302_v46, %v304_v19  ;;  %v311_v24 = vsel %vm309_vm7, %v304_v19, %v306_v20 }
 0x173   :  { %v322_v31 = vadd.f32 %v312_v21, %v289_v15  ;;  %v323_v33 = vadd.f32 %v311_v24, %v290_v11  ;;  %v335_v27 = vadd.f32 %v329_v26, %v327_v36 }
 0x175   :  { %v330_v42 = vmul.f32 %v322_v31, %v322_v31  ;;  %v331_v16 = vmul.f32 %v323_v33, %v323_v33  ;;  %v308_v23 = vpop.permute.xlu1 %307 }
 0x176   :  { %v310_v12 = vsel %vm309_vm7, %v306_v20, %v308_v23  ;;  %v317_v43 = vsel %vm309_vm7, %v308_v23, %v716_v32 }
 0x177   :  { %v324_v28 = vadd.f32 %v310_v12, %v291_v40  ;;  %v325_v22 = vadd.f32 %v317_v43, %v292_v41  ;;  %v336_v45 = vadd.f32 %v334_v34, %v330_v42  ;;  %v337_v8 = vadd.f32 %v335_v27, %v331_v16 }
 0x179   :  { %v332_v48 = vmul.f32 %v324_v28, %v324_v28  ;;  %v333_v49 = vmul.f32 %v325_v22, %v325_v22 }
 0x17b   :  { %v338_v51 = vadd.f32 %v336_v45, %v332_v48  ;;  %v339_v53 = vadd.f32 %v337_v8, %v333_v49 }
 0x17d   :  { %385 = vrsqrt.f32 %v338_v51  ;;  %vm342_vm8 = vcmp.eq.f32.partialorder %v338_v51, inf  ;;  %v345_v52 = vand.u32 2147483648, %v338_v51  ;;  %vm344_vm9 = vcmp.eq.f32.partialorder %v338_v51, 0.0 }
 0x17e   :  { %387 = vrsqrt.f32 %v339_v53  ;;  %vm349_vm10 = vcmp.eq.f32.partialorder %v339_v53, inf  ;;  %v352_v32 = vand.u32 2147483648, %v339_v53  ;;  %vm351_vm11 = vcmp.eq.f32.partialorder %v339_v53, 0.0 }
 0x18a   :  { %v386_v54 = vpop.eup %385 }
 0x18b   :  { %v388_v55 = vpop.eup %387  ;;  %v341_v47 = vmul.f32 %v386_v54, %v338_v51 }
 0x18c   :  { %v348_v56 = vmul.f32 %v388_v55, %v339_v53 }
 0x18d   :  { %v343_v44 = vsel %vm342_vm8, %v338_v51, %v341_v47 }
 0x18e   :  { %v346_v57 = vsel %vm344_vm9, %v345_v52, %v343_v44  ;;  %v350_v58 = vsel %vm349_vm10, %v339_v53, %v348_v56 }
 0x18f   :  { %v353_v59 = vsel %vm351_vm11, %v352_v32, %v350_v58  ;;  %v354_v60 = vmul.f32 0.04, %v346_v57 }
 0x190   :  { %v355_v61 = vmul.f32 0.04, %v353_v59 }
 0x191   :  { %356 = vst [vmem:[#allocation7] sm:$0xff] %v354_v60 }
 0x192   :  { %357 = vst [vmem:[#allocation7 + $0x8] sm:$0xff] %v355_v61 }
 0x193   :  { %440 = shalt.err (!%p437_p0)
}
 0x194   :  { %367 = dma.vmem_to_hbm [thread:$0]  %s365_s26, 256, %s790_s2, [#allocation4]  }
 0x195   :  { %453 = dma.done.wait [#allocation4], 256  }
 0x196   :  { %454 = vsyncadd [#allocation4], 4294967040 }
 0x197   :  { %371 = vsyncpa [#allocation3], 1 }
 0x198   :  { %372 = vsyncpa [#allocation6], 1 }
 0x199   :  { %373 = vsyncpa [#allocation4], 1 }

</bundles_post_ra>
